<compile_context>
chip_gen: v7x
topology: tpu7x:2x2x1
jax: 0.10.0
libtpu: 0.0.40
codegen_flags: <defaults>
</compile_context>

<pallas_src>
import jax
import jax.numpy as jnp
from jax.experimental import pallas as pl
from jax.experimental.pallas import tpu as pltpu


# -----------------------------------------------------------------------------
# Fused kernel: one grid step == one image, all four layers in VMEM.
# -----------------------------------------------------------------------------
def _fused_ae_kernel(x_ref,
                     l1_ref, r1_ref, b1_ref,
                     l2_ref, r2_ref, b2_ref,
                     l3_ref, r3_ref, b3_ref,
                     l4_ref, r4_ref, b4_ref,
                     out_ref):
    def layer(a, l_ref, r_ref, b_ref, act):
        acc = None
        for i in range(3):                       # 3 kernel rows, statically unrolled
            t = jnp.dot(l_ref[i], a, preferred_element_type=jnp.float32)
            t = jnp.dot(t, r_ref[i], preferred_element_type=jnp.float32)
            acc = t if acc is None else acc + t
        acc = acc + b_ref[...]
        if act == "relu":
            return jnp.maximum(acc, 0.0)
        # numerically stable sigmoid: exp of a non-positive argument only
        z = jnp.exp(-jnp.abs(acc))
        return jnp.where(acc >= 0.0, 1.0 / (1.0 + z), z / (1.0 + z))

    a = x_ref[0]                                  # (H, W)   == (H, W*Cin), Cin=1
    a = layer(a, l1_ref, r1_ref, b1_ref, "relu")      # -> (H/2, W/2*8)
    a = layer(a, l2_ref, r2_ref, b2_ref, "relu")      # -> (H/4, W/4*16)
    a = layer(a, l3_ref, r3_ref, b3_ref, "relu")      # -> (H/2, W/2*8)
    a = layer(a, l4_ref, r4_ref, b4_ref, "sigmoid")   # -> (H,   W)
    out_ref[0] = a


# -----------------------------------------------------------------------------
# Weight expansion (plain JAX, tiny):  conv / conv-transpose  ->  (L_i, R_i, bias row)
#
#   activation layout:  A[h, w*Ci + c]
#   conv  (stride s, pad p):     out[oh, ow*Co+d] = sum_{i,j,c} x[s*oh+i-p, s*ow+j-p, c] W[d,c,i,j]
#   convT (stride s, pad p, op): out[y , x *Co+d] = sum_{h,w,c,i,j: y=s*h-p+i, x=s*w-p+j} x[h,w,c] W[c,d,i,j]
# -----------------------------------------------------------------------------
def _conv_mats(weight, bias, Hi, Wi, Ho, Wo, stride, pad):
    """PyTorch nn.Conv2d weight (Co, Ci, 3, 3)."""
    Co, Ci, kh, kw = weight.shape
    oh = jnp.arange(Ho)
    hi = jnp.arange(Hi)
    ow = jnp.arange(Wo)
    wi = jnp.arange(Wi)
    Ls, Rs = [], []
    for i in range(kh):
        Ls.append((hi[None, :] == stride * oh[:, None] + i - pad).astype(jnp.float32))
        j = wi[:, None] - stride * ow[None, :] + pad          # (Wi, Wo)
        valid = (j >= 0) & (j < kw)
        jc = jnp.clip(j, 0, kw - 1)
        tap = weight[:, :, i, :][:, :, jc]                    # (Co, Ci, Wi, Wo)
        r4 = jnp.where(valid[None, None], tap, 0.0)
        Rs.append(r4.transpose(2, 1, 3, 0).reshape(Wi * Ci, Wo * Co))
    return jnp.stack(Ls), jnp.stack(Rs), jnp.tile(bias, Wo)[None, :]


def _convT_mats(weight, bias, Hi, Wi, Ho, Wo, stride, pad):
    """PyTorch nn.ConvTranspose2d weight (Ci, Co, 3, 3); output_padding folded into Ho/Wo."""
    Ci, Co, kh, kw = weight.shape
    y = jnp.arange(Ho)
    h = jnp.arange(Hi)
    x = jnp.arange(Wo)
    w = jnp.arange(Wi)
    Ls, Rs = [], []
    for i in range(kh):
        Ls.append((y[:, None] == stride * h[None, :] - pad + i).astype(jnp.float32))
        j = x[None, :] - stride * w[:, None] + pad            # (Wi, Wo)
        valid = (j >= 0) & (j < kw)
        jc = jnp.clip(j, 0, kw - 1)
        tap = weight[:, :, i, :][:, :, jc]                    # (Ci, Co, Wi, Wo)
        r4 = jnp.where(valid[None, None], tap, 0.0)
        Rs.append(r4.transpose(2, 0, 3, 1).reshape(Wi * Ci, Wo * Co))
    return jnp.stack(Ls), jnp.stack(Rs), jnp.tile(bias, Wo)[None, :]


def _full_spec(arr):
    nd = arr.ndim
    return pl.BlockSpec(arr.shape, lambda n, _nd=nd: (0,) * _nd)


def _fused_forward(x_img, mats):
    """x_img: (N, H, W) f32.  mats: 4 x (L, R, bias_row)."""
    N, H, W = x_img.shape
    weights = [a for m in mats for a in m]        # L1,R1,b1, ..., L4,R4,b4
    in_specs = [pl.BlockSpec((1, H, W), lambda n: (n, 0, 0))]
    in_specs += [_full_spec(a) for a in weights]
    return pl.pallas_call(
        _fused_ae_kernel,
        out_shape=jax.ShapeDtypeStruct((N, H, W), jnp.float32),
        grid_spec=pltpu.PrefetchScalarGridSpec(
            num_scalar_prefetch=0,
            grid=(N,),
            in_specs=in_specs,
            out_specs=pl.BlockSpec((1, H, W), lambda n: (n, 0, 0)),
        ),
        compiler_params=pltpu.CompilerParams(dimension_semantics=("parallel",)),
    )(x_img, *weights)


# -----------------------------------------------------------------------------
# AutoEncoder parameters + forward
# -----------------------------------------------------------------------------
def init_params(key):
    ks = jax.random.split(key, 8)
    s = 0.1
    return {
        # encoder: Conv2d(1->8, k3 s2 p1), Conv2d(8->16, k3 s2 p1)
        "enc_w1": s * jax.random.normal(ks[0], (8, 1, 3, 3), jnp.float32),
        "enc_b1": s * jax.random.normal(ks[1], (8,), jnp.float32),
        "enc_w2": s * jax.random.normal(ks[2], (16, 8, 3, 3), jnp.float32),
        "enc_b2": s * jax.random.normal(ks[3], (16,), jnp.float32),
        # decoder: ConvT2d(16->8, k3 s2 p1 op1), ConvT2d(8->1, k3 s2 p1 op1)
        "dec_w1": s * jax.random.normal(ks[4], (16, 8, 3, 3), jnp.float32),
        "dec_b1": s * jax.random.normal(ks[5], (8,), jnp.float32),
        "dec_w2": s * jax.random.normal(ks[6], (8, 1, 3, 3), jnp.float32),
        "dec_b2": s * jax.random.normal(ks[7], (1,), jnp.float32),
    }


def autoencoder_forward(params, x_nchw):
    N, C, H, W = x_nchw.shape
    assert C == 1 and H % 4 == 0 and W % 4 == 0
    H1, W1, H2, W2 = H // 2, W // 2, H // 4, W // 4
    m1 = _conv_mats(params["enc_w1"], params["enc_b1"], H, W, H1, W1, 2, 1)
    m2 = _conv_mats(params["enc_w2"], params["enc_b2"], H1, W1, H2, W2, 2, 1)
    m3 = _convT_mats(params["dec_w1"], params["dec_b1"], H2, W2, H1, W1, 2, 1)
    m4 = _convT_mats(params["dec_w2"], params["dec_b2"], H1, W1, H, W, 2, 1)
    y = _fused_forward(x_nchw[:, 0], (m1, m2, m3, m4))   # single NCHW->(N,H,W) squeeze
    return y[:, None, :, :]


# -----------------------------------------------------------------------------
# Pure-XLA reference (for numerical verification of the Pallas path)
# -----------------------------------------------------------------------------
def reference_forward(params, x):
    dn = ("NCHW", "OIHW", "NCHW")

    def conv(x, w, b, s, p):
        y = jax.lax.conv_general_dilated(
            x, w, window_strides=(s, s), padding=((p, p), (p, p)),
            dimension_numbers=dn, precision=jax.lax.Precision.HIGHEST)
        return y + b[None, :, None, None]

    def convt(x, w, b, s, p, op):
        k = w.shape[-1]
        w_eq = jnp.flip(w, axis=(-2, -1)).transpose(1, 0, 2, 3)
        y = jax.lax.conv_general_dilated(
            x, w_eq, window_strides=(1, 1),
            padding=((k - 1 - p, k - 1 - p + op), (k - 1 - p, k - 1 - p + op)),
            lhs_dilation=(s, s), dimension_numbers=dn,
            precision=jax.lax.Precision.HIGHEST)
        return y + b[None, :, None, None]

    h = jax.nn.relu(conv(x, params["enc_w1"], params["enc_b1"], 2, 1))
    h = jax.nn.relu(conv(h, params["enc_w2"], params["enc_b2"], 2, 1))
    h = jax.nn.relu(convt(h, params["dec_w1"], params["dec_b1"], 2, 1, 1))
    return jax.nn.sigmoid(convt(h, params["dec_w2"], params["dec_b2"], 2, 1, 1))


if __name__ == "__main__":
    key = jax.random.PRNGKey(0)
    pkey, xkey = jax.random.split(key)
    params = init_params(pkey)

    # small smoke-test shape consistent with the module (1-channel square images)
    x = jax.random.normal(xkey, (2, 1, 16, 16), jnp.float32)

    out = jax.jit(autoencoder_forward)(params, x)
    out = jax.block_until_ready(out)

    assert out.shape == (2, 1, 16, 16), out.shape
    assert out.dtype == jnp.float32
    assert bool(jnp.all(jnp.isfinite(out)))

    # verify against the XLA convolution reference (loose tol covers MXU f32 pass diffs)
    ref = jax.block_until_ready(jax.jit(reference_forward)(params, x))
    err = float(jnp.max(jnp.abs(out - ref)))
    assert err < 5e-3, f"mismatch vs XLA reference: max abs err {err}"

    print("KERNEL_OK")
</pallas_src>

<mosaic_0001>
module attributes {stable_mosaic.version = 11 : i64} {
  func.func @_fused_ae_kernel(%arg0: i32, %arg1: memref<1x16x16xf32, #tpu.memory_space<vmem>>, %arg2: memref<3x8x16xf32, #tpu.memory_space<vmem>>, %arg3: memref<3x16x64xf32, #tpu.memory_space<vmem>>, %arg4: memref<1x64xf32, #tpu.memory_space<vmem>>, %arg5: memref<3x4x8xf32, #tpu.memory_space<vmem>>, %arg6: memref<3x64x64xf32, #tpu.memory_space<vmem>>, %arg7: memref<1x64xf32, #tpu.memory_space<vmem>>, %arg8: memref<3x8x4xf32, #tpu.memory_space<vmem>>, %arg9: memref<3x64x64xf32, #tpu.memory_space<vmem>>, %arg10: memref<1x64xf32, #tpu.memory_space<vmem>>, %arg11: memref<3x16x8xf32, #tpu.memory_space<vmem>>, %arg12: memref<3x64x16xf32, #tpu.memory_space<vmem>>, %arg13: memref<1x16xf32, #tpu.memory_space<vmem>>, %arg14: memref<1x16x16xf32, #tpu.memory_space<vmem>>) attributes {dimension_semantics = [#tpu.dimension_semantics<parallel>], iteration_bounds = array<i64: 2>, scalar_prefetch = 0 : i64, scratch_operands = 0 : i64, tpu.core_type = #tpu.core_type<tc>, window_params = [{transform_indices = @transform_0, window_bounds = array<i64: 1, 16, 16>}, {pipeline_mode = #tpu.pipeline_mode<synchronous>, transform_indices = @transform_1, window_bounds = array<i64: 3, 8, 16>}, {pipeline_mode = #tpu.pipeline_mode<synchronous>, transform_indices = @transform_2, window_bounds = array<i64: 3, 16, 64>}, {pipeline_mode = #tpu.pipeline_mode<synchronous>, transform_indices = @transform_3, window_bounds = array<i64: 1, 64>}, {pipeline_mode = #tpu.pipeline_mode<synchronous>, transform_indices = @transform_4, window_bounds = array<i64: 3, 4, 8>}, {pipeline_mode = #tpu.pipeline_mode<synchronous>, transform_indices = @transform_5, window_bounds = array<i64: 3, 64, 64>}, {pipeline_mode = #tpu.pipeline_mode<synchronous>, transform_indices = @transform_6, window_bounds = array<i64: 1, 64>}, {pipeline_mode = #tpu.pipeline_mode<synchronous>, transform_indices = @transform_7, window_bounds = array<i64: 3, 8, 4>}, {pipeline_mode = #tpu.pipeline_mode<synchronous>, transform_indices = @transform_8, window_bounds = array<i64: 3, 64, 64>}, {pipeline_mode = #tpu.pipeline_mode<synchronous>, transform_indices = @transform_9, window_bounds = array<i64: 1, 64>}, {pipeline_mode = #tpu.pipeline_mode<synchronous>, transform_indices = @transform_10, window_bounds = array<i64: 3, 16, 8>}, {pipeline_mode = #tpu.pipeline_mode<synchronous>, transform_indices = @transform_11, window_bounds = array<i64: 3, 64, 16>}, {pipeline_mode = #tpu.pipeline_mode<synchronous>, transform_indices = @transform_12, window_bounds = array<i64: 1, 16>}, {transform_indices = @transform_13, window_bounds = array<i64: 1, 16, 16>}]} {
    %c0 = arith.constant 0 : index
    %c0_0 = arith.constant 0 : index
    %c0_1 = arith.constant 0 : index
    %0 = vector.load %arg1[%c0, %c0_0, %c0_1] : memref<1x16x16xf32, #tpu.memory_space<vmem>>, vector<1x16x16xf32>
    %1 = vector.shape_cast %0 : vector<1x16x16xf32> to vector<16x16xf32>
    %c0_2 = arith.constant 0 : index
    %c0_3 = arith.constant 0 : index
    %c0_4 = arith.constant 0 : index
    %2 = vector.load %arg2[%c0_2, %c0_3, %c0_4] : memref<3x8x16xf32, #tpu.memory_space<vmem>>, vector<1x8x16xf32>
    %3 = vector.shape_cast %2 : vector<1x8x16xf32> to vector<8x16xf32>
    %cst = arith.constant dense<0.000000e+00> : vector<8x16xf32>
    %4 = tpu.matmul %3, %1, %cst {dimension_numbers = #tpu.dot_dimension_numbers<[1], [0], [0], [1], [0, 0, 1, 1], [], []>} : vector<8x16xf32>, vector<16x16xf32>, vector<8x16xf32> -> vector<8x16xf32>
    %c0_5 = arith.constant 0 : index
    %c0_6 = arith.constant 0 : index
    %c0_7 = arith.constant 0 : index
    %5 = vector.load %arg3[%c0_5, %c0_6, %c0_7] : memref<3x16x64xf32, #tpu.memory_space<vmem>>, vector<1x16x64xf32>
    %6 = vector.shape_cast %5 : vector<1x16x64xf32> to vector<16x64xf32>
    %cst_8 = arith.constant dense<0.000000e+00> : vector<8x64xf32>
    %7 = tpu.matmul %4, %6, %cst_8 {dimension_numbers = #tpu.dot_dimension_numbers<[1], [0], [0], [1], [0, 0, 1, 1], [], []>} : vector<8x16xf32>, vector<16x64xf32>, vector<8x64xf32> -> vector<8x64xf32>
    %c1 = arith.constant 1 : index
    %c0_9 = arith.constant 0 : index
    %c0_10 = arith.constant 0 : index
    %8 = vector.load %arg2[%c1, %c0_9, %c0_10] : memref<3x8x16xf32, #tpu.memory_space<vmem>>, vector<1x8x16xf32>
    %9 = vector.shape_cast %8 : vector<1x8x16xf32> to vector<8x16xf32>
    %cst_11 = arith.constant dense<0.000000e+00> : vector<8x16xf32>
    %10 = tpu.matmul %9, %1, %cst_11 {dimension_numbers = #tpu.dot_dimension_numbers<[1], [0], [0], [1], [0, 0, 1, 1], [], []>} : vector<8x16xf32>, vector<16x16xf32>, vector<8x16xf32> -> vector<8x16xf32>
    %c1_12 = arith.constant 1 : index
    %c0_13 = arith.constant 0 : index
    %c0_14 = arith.constant 0 : index
    %11 = vector.load %arg3[%c1_12, %c0_13, %c0_14] : memref<3x16x64xf32, #tpu.memory_space<vmem>>, vector<1x16x64xf32>
    %12 = vector.shape_cast %11 : vector<1x16x64xf32> to vector<16x64xf32>
    %cst_15 = arith.constant dense<0.000000e+00> : vector<8x64xf32>
    %13 = tpu.matmul %10, %12, %cst_15 {dimension_numbers = #tpu.dot_dimension_numbers<[1], [0], [0], [1], [0, 0, 1, 1], [], []>} : vector<8x16xf32>, vector<16x64xf32>, vector<8x64xf32> -> vector<8x64xf32>
    %14 = arith.addf %7, %13 : vector<8x64xf32>
    %c2 = arith.constant 2 : index
    %c0_16 = arith.constant 0 : index
    %c0_17 = arith.constant 0 : index
    %15 = vector.load %arg2[%c2, %c0_16, %c0_17] : memref<3x8x16xf32, #tpu.memory_space<vmem>>, vector<1x8x16xf32>
    %16 = vector.shape_cast %15 : vector<1x8x16xf32> to vector<8x16xf32>
    %cst_18 = arith.constant dense<0.000000e+00> : vector<8x16xf32>
    %17 = tpu.matmul %16, %1, %cst_18 {dimension_numbers = #tpu.dot_dimension_numbers<[1], [0], [0], [1], [0, 0, 1, 1], [], []>} : vector<8x16xf32>, vector<16x16xf32>, vector<8x16xf32> -> vector<8x16xf32>
    %c2_19 = arith.constant 2 : index
    %c0_20 = arith.constant 0 : index
    %c0_21 = arith.constant 0 : index
    %18 = vector.load %arg3[%c2_19, %c0_20, %c0_21] : memref<3x16x64xf32, #tpu.memory_space<vmem>>, vector<1x16x64xf32>
    %19 = vector.shape_cast %18 : vector<1x16x64xf32> to vector<16x64xf32>
    %cst_22 = arith.constant dense<0.000000e+00> : vector<8x64xf32>
    %20 = tpu.matmul %17, %19, %cst_22 {dimension_numbers = #tpu.dot_dimension_numbers<[1], [0], [0], [1], [0, 0, 1, 1], [], []>} : vector<8x16xf32>, vector<16x64xf32>, vector<8x64xf32> -> vector<8x64xf32>
    %21 = arith.addf %14, %20 : vector<8x64xf32>
    %c0_23 = arith.constant 0 : index
    %c0_24 = arith.constant 0 : index
    %22 = vector.load %arg4[%c0_23, %c0_24] : memref<1x64xf32, #tpu.memory_space<vmem>>, vector<1x64xf32>
    %23 = vector.broadcast %22 : vector<1x64xf32> to vector<8x64xf32>
    %24 = arith.addf %21, %23 : vector<8x64xf32>
    %cst_25 = arith.constant 0.000000e+00 : f32
    %25 = vector.broadcast %cst_25 : f32 to vector<8x64xf32>
    %26 = arith.maximumf %24, %25 : vector<8x64xf32>
    %c0_26 = arith.constant 0 : index
    %c0_27 = arith.constant 0 : index
    %c0_28 = arith.constant 0 : index
    %27 = vector.load %arg5[%c0_26, %c0_27, %c0_28] : memref<3x4x8xf32, #tpu.memory_space<vmem>>, vector<1x4x8xf32>
    %28 = vector.shape_cast %27 : vector<1x4x8xf32> to vector<4x8xf32>
    %cst_29 = arith.constant dense<0.000000e+00> : vector<4x64xf32>
    %29 = tpu.matmul %28, %26, %cst_29 {dimension_numbers = #tpu.dot_dimension_numbers<[1], [0], [0], [1], [0, 0, 1, 1], [], []>} : vector<4x8xf32>, vector<8x64xf32>, vector<4x64xf32> -> vector<4x64xf32>
    %c0_30 = arith.constant 0 : index
    %c0_31 = arith.constant 0 : index
    %c0_32 = arith.constant 0 : index
    %30 = vector.load %arg6[%c0_30, %c0_31, %c0_32] : memref<3x64x64xf32, #tpu.memory_space<vmem>>, vector<1x64x64xf32>
    %31 = vector.shape_cast %30 : vector<1x64x64xf32> to vector<64x64xf32>
    %cst_33 = arith.constant dense<0.000000e+00> : vector<4x64xf32>
    %32 = tpu.matmul %29, %31, %cst_33 {dimension_numbers = #tpu.dot_dimension_numbers<[1], [0], [0], [1], [0, 0, 1, 1], [], []>} : vector<4x64xf32>, vector<64x64xf32>, vector<4x64xf32> -> vector<4x64xf32>
    %c1_34 = arith.constant 1 : index
    %c0_35 = arith.constant 0 : index
    %c0_36 = arith.constant 0 : index
    %33 = vector.load %arg5[%c1_34, %c0_35, %c0_36] : memref<3x4x8xf32, #tpu.memory_space<vmem>>, vector<1x4x8xf32>
    %34 = vector.shape_cast %33 : vector<1x4x8xf32> to vector<4x8xf32>
    %cst_37 = arith.constant dense<0.000000e+00> : vector<4x64xf32>
    %35 = tpu.matmul %34, %26, %cst_37 {dimension_numbers = #tpu.dot_dimension_numbers<[1], [0], [0], [1], [0, 0, 1, 1], [], []>} : vector<4x8xf32>, vector<8x64xf32>, vector<4x64xf32> -> vector<4x64xf32>
    %c1_38 = arith.constant 1 : index
    %c0_39 = arith.constant 0 : index
    %c0_40 = arith.constant 0 : index
    %36 = vector.load %arg6[%c1_38, %c0_39, %c0_40] : memref<3x64x64xf32, #tpu.memory_space<vmem>>, vector<1x64x64xf32>
    %37 = vector.shape_cast %36 : vector<1x64x64xf32> to vector<64x64xf32>
    %cst_41 = arith.constant dense<0.000000e+00> : vector<4x64xf32>
    %38 = tpu.matmul %35, %37, %cst_41 {dimension_numbers = #tpu.dot_dimension_numbers<[1], [0], [0], [1], [0, 0, 1, 1], [], []>} : vector<4x64xf32>, vector<64x64xf32>, vector<4x64xf32> -> vector<4x64xf32>
    %39 = arith.addf %32, %38 : vector<4x64xf32>
    %c2_42 = arith.constant 2 : index
    %c0_43 = arith.constant 0 : index
    %c0_44 = arith.constant 0 : index
    %40 = vector.load %arg5[%c2_42, %c0_43, %c0_44] : memref<3x4x8xf32, #tpu.memory_space<vmem>>, vector<1x4x8xf32>
    %41 = vector.shape_cast %40 : vector<1x4x8xf32> to vector<4x8xf32>
    %cst_45 = arith.constant dense<0.000000e+00> : vector<4x64xf32>
    %42 = tpu.matmul %41, %26, %cst_45 {dimension_numbers = #tpu.dot_dimension_numbers<[1], [0], [0], [1], [0, 0, 1, 1], [], []>} : vector<4x8xf32>, vector<8x64xf32>, vector<4x64xf32> -> vector<4x64xf32>
    %c2_46 = arith.constant 2 : index
    %c0_47 = arith.constant 0 : index
    %c0_48 = arith.constant 0 : index
    %43 = vector.load %arg6[%c2_46, %c0_47, %c0_48] : memref<3x64x64xf32, #tpu.memory_space<vmem>>, vector<1x64x64xf32>
    %44 = vector.shape_cast %43 : vector<1x64x64xf32> to vector<64x64xf32>
    %cst_49 = arith.constant dense<0.000000e+00> : vector<4x64xf32>
    %45 = tpu.matmul %42, %44, %cst_49 {dimension_numbers = #tpu.dot_dimension_numbers<[1], [0], [0], [1], [0, 0, 1, 1], [], []>} : vector<4x64xf32>, vector<64x64xf32>, vector<4x64xf32> -> vector<4x64xf32>
    %46 = arith.addf %39, %45 : vector<4x64xf32>
    %c0_50 = arith.constant 0 : index
    %c0_51 = arith.constant 0 : index
    %47 = vector.load %arg7[%c0_50, %c0_51] : memref<1x64xf32, #tpu.memory_space<vmem>>, vector<1x64xf32>
    %48 = vector.broadcast %47 : vector<1x64xf32> to vector<4x64xf32>
    %49 = arith.addf %46, %48 : vector<4x64xf32>
    %cst_52 = arith.constant 0.000000e+00 : f32
    %50 = vector.broadcast %cst_52 : f32 to vector<4x64xf32>
    %51 = arith.maximumf %49, %50 : vector<4x64xf32>
    %c0_53 = arith.constant 0 : index
    %c0_54 = arith.constant 0 : index
    %c0_55 = arith.constant 0 : index
    %52 = vector.load %arg8[%c0_53, %c0_54, %c0_55] : memref<3x8x4xf32, #tpu.memory_space<vmem>>, vector<1x8x4xf32>
    %53 = vector.shape_cast %52 : vector<1x8x4xf32> to vector<8x4xf32>
    %cst_56 = arith.constant dense<0.000000e+00> : vector<8x64xf32>
    %54 = tpu.matmul %53, %51, %cst_56 {dimension_numbers = #tpu.dot_dimension_numbers<[1], [0], [0], [1], [0, 0, 1, 1], [], []>} : vector<8x4xf32>, vector<4x64xf32>, vector<8x64xf32> -> vector<8x64xf32>
    %c0_57 = arith.constant 0 : index
    %c0_58 = arith.constant 0 : index
    %c0_59 = arith.constant 0 : index
    %55 = vector.load %arg9[%c0_57, %c0_58, %c0_59] : memref<3x64x64xf32, #tpu.memory_space<vmem>>, vector<1x64x64xf32>
    %56 = vector.shape_cast %55 : vector<1x64x64xf32> to vector<64x64xf32>
    %cst_60 = arith.constant dense<0.000000e+00> : vector<8x64xf32>
    %57 = tpu.matmul %54, %56, %cst_60 {dimension_numbers = #tpu.dot_dimension_numbers<[1], [0], [0], [1], [0, 0, 1, 1], [], []>} : vector<8x64xf32>, vector<64x64xf32>, vector<8x64xf32> -> vector<8x64xf32>
    %c1_61 = arith.constant 1 : index
    %c0_62 = arith.constant 0 : index
    %c0_63 = arith.constant 0 : index
    %58 = vector.load %arg8[%c1_61, %c0_62, %c0_63] : memref<3x8x4xf32, #tpu.memory_space<vmem>>, vector<1x8x4xf32>
    %59 = vector.shape_cast %58 : vector<1x8x4xf32> to vector<8x4xf32>
    %cst_64 = arith.constant dense<0.000000e+00> : vector<8x64xf32>
    %60 = tpu.matmul %59, %51, %cst_64 {dimension_numbers = #tpu.dot_dimension_numbers<[1], [0], [0], [1], [0, 0, 1, 1], [], []>} : vector<8x4xf32>, vector<4x64xf32>, vector<8x64xf32> -> vector<8x64xf32>
    %c1_65 = arith.constant 1 : index
    %c0_66 = arith.constant 0 : index
    %c0_67 = arith.constant 0 : index
    %61 = vector.load %arg9[%c1_65, %c0_66, %c0_67] : memref<3x64x64xf32, #tpu.memory_space<vmem>>, vector<1x64x64xf32>
    %62 = vector.shape_cast %61 : vector<1x64x64xf32> to vector<64x64xf32>
    %cst_68 = arith.constant dense<0.000000e+00> : vector<8x64xf32>
    %63 = tpu.matmul %60, %62, %cst_68 {dimension_numbers = #tpu.dot_dimension_numbers<[1], [0], [0], [1], [0, 0, 1, 1], [], []>} : vector<8x64xf32>, vector<64x64xf32>, vector<8x64xf32> -> vector<8x64xf32>
    %64 = arith.addf %57, %63 : vector<8x64xf32>
    %c2_69 = arith.constant 2 : index
    %c0_70 = arith.constant 0 : index
    %c0_71 = arith.constant 0 : index
    %65 = vector.load %arg8[%c2_69, %c0_70, %c0_71] : memref<3x8x4xf32, #tpu.memory_space<vmem>>, vector<1x8x4xf32>
    %66 = vector.shape_cast %65 : vector<1x8x4xf32> to vector<8x4xf32>
    %cst_72 = arith.constant dense<0.000000e+00> : vector<8x64xf32>
    %67 = tpu.matmul %66, %51, %cst_72 {dimension_numbers = #tpu.dot_dimension_numbers<[1], [0], [0], [1], [0, 0, 1, 1], [], []>} : vector<8x4xf32>, vector<4x64xf32>, vector<8x64xf32> -> vector<8x64xf32>
    %c2_73 = arith.constant 2 : index
    %c0_74 = arith.constant 0 : index
    %c0_75 = arith.constant 0 : index
    %68 = vector.load %arg9[%c2_73, %c0_74, %c0_75] : memref<3x64x64xf32, #tpu.memory_space<vmem>>, vector<1x64x64xf32>
    %69 = vector.shape_cast %68 : vector<1x64x64xf32> to vector<64x64xf32>
    %cst_76 = arith.constant dense<0.000000e+00> : vector<8x64xf32>
    %70 = tpu.matmul %67, %69, %cst_76 {dimension_numbers = #tpu.dot_dimension_numbers<[1], [0], [0], [1], [0, 0, 1, 1], [], []>} : vector<8x64xf32>, vector<64x64xf32>, vector<8x64xf32> -> vector<8x64xf32>
    %71 = arith.addf %64, %70 : vector<8x64xf32>
    %c0_77 = arith.constant 0 : index
    %c0_78 = arith.constant 0 : index
    %72 = vector.load %arg10[%c0_77, %c0_78] : memref<1x64xf32, #tpu.memory_space<vmem>>, vector<1x64xf32>
    %73 = vector.broadcast %72 : vector<1x64xf32> to vector<8x64xf32>
    %74 = arith.addf %71, %73 : vector<8x64xf32>
    %cst_79 = arith.constant 0.000000e+00 : f32
    %75 = vector.broadcast %cst_79 : f32 to vector<8x64xf32>
    %76 = arith.maximumf %74, %75 : vector<8x64xf32>
    %c0_80 = arith.constant 0 : index
    %c0_81 = arith.constant 0 : index
    %c0_82 = arith.constant 0 : index
    %77 = vector.load %arg11[%c0_80, %c0_81, %c0_82] : memref<3x16x8xf32, #tpu.memory_space<vmem>>, vector<1x16x8xf32>
    %78 = vector.shape_cast %77 : vector<1x16x8xf32> to vector<16x8xf32>
    %cst_83 = arith.constant dense<0.000000e+00> : vector<16x64xf32>
    %79 = tpu.matmul %78, %76, %cst_83 {dimension_numbers = #tpu.dot_dimension_numbers<[1], [0], [0], [1], [0, 0, 1, 1], [], []>} : vector<16x8xf32>, vector<8x64xf32>, vector<16x64xf32> -> vector<16x64xf32>
    %c0_84 = arith.constant 0 : index
    %c0_85 = arith.constant 0 : index
    %c0_86 = arith.constant 0 : index
    %80 = vector.load %arg12[%c0_84, %c0_85, %c0_86] : memref<3x64x16xf32, #tpu.memory_space<vmem>>, vector<1x64x16xf32>
    %81 = vector.shape_cast %80 : vector<1x64x16xf32> to vector<64x16xf32>
    %cst_87 = arith.constant dense<0.000000e+00> : vector<16x16xf32>
    %82 = tpu.matmul %79, %81, %cst_87 {dimension_numbers = #tpu.dot_dimension_numbers<[1], [0], [0], [1], [0, 0, 1, 1], [], []>} : vector<16x64xf32>, vector<64x16xf32>, vector<16x16xf32> -> vector<16x16xf32>
    %c1_88 = arith.constant 1 : index
    %c0_89 = arith.constant 0 : index
    %c0_90 = arith.constant 0 : index
    %83 = vector.load %arg11[%c1_88, %c0_89, %c0_90] : memref<3x16x8xf32, #tpu.memory_space<vmem>>, vector<1x16x8xf32>
    %84 = vector.shape_cast %83 : vector<1x16x8xf32> to vector<16x8xf32>
    %cst_91 = arith.constant dense<0.000000e+00> : vector<16x64xf32>
    %85 = tpu.matmul %84, %76, %cst_91 {dimension_numbers = #tpu.dot_dimension_numbers<[1], [0], [0], [1], [0, 0, 1, 1], [], []>} : vector<16x8xf32>, vector<8x64xf32>, vector<16x64xf32> -> vector<16x64xf32>
    %c1_92 = arith.constant 1 : index
    %c0_93 = arith.constant 0 : index
    %c0_94 = arith.constant 0 : index
    %86 = vector.load %arg12[%c1_92, %c0_93, %c0_94] : memref<3x64x16xf32, #tpu.memory_space<vmem>>, vector<1x64x16xf32>
    %87 = vector.shape_cast %86 : vector<1x64x16xf32> to vector<64x16xf32>
    %cst_95 = arith.constant dense<0.000000e+00> : vector<16x16xf32>
    %88 = tpu.matmul %85, %87, %cst_95 {dimension_numbers = #tpu.dot_dimension_numbers<[1], [0], [0], [1], [0, 0, 1, 1], [], []>} : vector<16x64xf32>, vector<64x16xf32>, vector<16x16xf32> -> vector<16x16xf32>
    %89 = arith.addf %82, %88 : vector<16x16xf32>
    %c2_96 = arith.constant 2 : index
    %c0_97 = arith.constant 0 : index
    %c0_98 = arith.constant 0 : index
    %90 = vector.load %arg11[%c2_96, %c0_97, %c0_98] : memref<3x16x8xf32, #tpu.memory_space<vmem>>, vector<1x16x8xf32>
    %91 = vector.shape_cast %90 : vector<1x16x8xf32> to vector<16x8xf32>
    %cst_99 = arith.constant dense<0.000000e+00> : vector<16x64xf32>
    %92 = tpu.matmul %91, %76, %cst_99 {dimension_numbers = #tpu.dot_dimension_numbers<[1], [0], [0], [1], [0, 0, 1, 1], [], []>} : vector<16x8xf32>, vector<8x64xf32>, vector<16x64xf32> -> vector<16x64xf32>
    %c2_100 = arith.constant 2 : index
    %c0_101 = arith.constant 0 : index
    %c0_102 = arith.constant 0 : index
    %93 = vector.load %arg12[%c2_100, %c0_101, %c0_102] : memref<3x64x16xf32, #tpu.memory_space<vmem>>, vector<1x64x16xf32>
    %94 = vector.shape_cast %93 : vector<1x64x16xf32> to vector<64x16xf32>
    %cst_103 = arith.constant dense<0.000000e+00> : vector<16x16xf32>
    %95 = tpu.matmul %92, %94, %cst_103 {dimension_numbers = #tpu.dot_dimension_numbers<[1], [0], [0], [1], [0, 0, 1, 1], [], []>} : vector<16x64xf32>, vector<64x16xf32>, vector<16x16xf32> -> vector<16x16xf32>
    %96 = arith.addf %89, %95 : vector<16x16xf32>
    %c0_104 = arith.constant 0 : index
    %c0_105 = arith.constant 0 : index
    %97 = vector.load %arg13[%c0_104, %c0_105] : memref<1x16xf32, #tpu.memory_space<vmem>>, vector<1x16xf32>
    %98 = vector.broadcast %97 : vector<1x16xf32> to vector<16x16xf32>
    %99 = arith.addf %96, %98 : vector<16x16xf32>
    %100 = math.absf %99 : vector<16x16xf32>
    %cst_106 = arith.constant 0.000000e+00 : f32
    %101 = vector.broadcast %cst_106 : f32 to vector<16x16xf32>
    %102 = arith.subf %101, %100 : vector<16x16xf32>
    %103 = math.exp %102 : vector<16x16xf32>
    %cst_107 = arith.constant 0.000000e+00 : f32
    %104 = vector.broadcast %cst_107 : f32 to vector<16x16xf32>
    %105 = arith.cmpf oge, %99, %104 : vector<16x16xf32>
    %cst_108 = arith.constant 1.000000e+00 : f32
    %106 = vector.broadcast %cst_108 : f32 to vector<16x16xf32>
    %107 = arith.addf %106, %103 : vector<16x16xf32>
    %cst_109 = arith.constant 1.000000e+00 : f32
    %108 = vector.broadcast %cst_109 : f32 to vector<16x16xf32>
    %109 = arith.divf %108, %107 : vector<16x16xf32>
    %cst_110 = arith.constant 1.000000e+00 : f32
    %110 = vector.broadcast %cst_110 : f32 to vector<16x16xf32>
    %111 = arith.addf %110, %103 : vector<16x16xf32>
    %112 = arith.divf %103, %111 : vector<16x16xf32>
    %113 = arith.select %105, %109, %112 : vector<16x16xi1>, vector<16x16xf32>
    %c0_111 = arith.constant 0 : index
    %c0_112 = arith.constant 0 : index
    %c0_113 = arith.constant 0 : index
    %114 = vector.load %arg14[%c0_111, %c0_112, %c0_113] : memref<1x16x16xf32, #tpu.memory_space<vmem>>, vector<1x16x16xf32>
    %115 = vector.shape_cast %114 : vector<1x16x16xf32> to vector<16x16xf32>
    %116 = vector.shape_cast %113 : vector<16x16xf32> to vector<1x16x16xf32>
    tpu.vector_store %arg14[%c0_111, %c0_112, %c0_113], %116 {strides = array<i32>} : memref<1x16x16xf32, #tpu.memory_space<vmem>>, vector<1x16x16xf32>,
    return
  }
  func.func @transform_0(%arg0: i32) -> (i32, i32, i32) {
    %c0_i32 = arith.constant 0 : i32
    %c0_i32_0 = arith.constant 0 : i32
    %c0_i32_1 = arith.constant 0 : i32
    return %arg0, %c0_i32, %c0_i32_0 : i32, i32, i32
  }
  func.func @transform_1(%arg0: i32) -> (i32, i32, i32) {
    %c0_i32 = arith.constant 0 : i32
    %c0_i32_0 = arith.constant 0 : i32
    %c0_i32_1 = arith.constant 0 : i32
    %c0_i32_2 = arith.constant 0 : i32
    return %c0_i32, %c0_i32_0, %c0_i32_1 : i32, i32, i32
  }
  func.func @transform_2(%arg0: i32) -> (i32, i32, i32) {
    %c0_i32 = arith.constant 0 : i32
    %c0_i32_0 = arith.constant 0 : i32
    %c0_i32_1 = arith.constant 0 : i32
    %c0_i32_2 = arith.constant 0 : i32
    return %c0_i32, %c0_i32_0, %c0_i32_1 : i32, i32, i32
  }
  func.func @transform_3(%arg0: i32) -> (i32, i32) {
    %c0_i32 = arith.constant 0 : i32
    %c0_i32_0 = arith.constant 0 : i32
    %c0_i32_1 = arith.constant 0 : i32
    return %c0_i32, %c0_i32_0 : i32, i32
  }
  func.func @transform_4(%arg0: i32) -> (i32, i32, i32) {
    %c0_i32 = arith.constant 0 : i32
    %c0_i32_0 = arith.constant 0 : i32
    %c0_i32_1 = arith.constant 0 : i32
    %c0_i32_2 = arith.constant 0 : i32
    return %c0_i32, %c0_i32_0, %c0_i32_1 : i32, i32, i32
  }
  func.func @transform_5(%arg0: i32) -> (i32, i32, i32) {
    %c0_i32 = arith.constant 0 : i32
    %c0_i32_0 = arith.constant 0 : i32
    %c0_i32_1 = arith.constant 0 : i32
    %c0_i32_2 = arith.constant 0 : i32
    return %c0_i32, %c0_i32_0, %c0_i32_1 : i32, i32, i32
  }
  func.func @transform_6(%arg0: i32) -> (i32, i32) {
    %c0_i32 = arith.constant 0 : i32
    %c0_i32_0 = arith.constant 0 : i32
    %c0_i32_1 = arith.constant 0 : i32
    return %c0_i32, %c0_i32_0 : i32, i32
  }
  func.func @transform_7(%arg0: i32) -> (i32, i32, i32) {
    %c0_i32 = arith.constant 0 : i32
    %c0_i32_0 = arith.constant 0 : i32
    %c0_i32_1 = arith.constant 0 : i32
    %c0_i32_2 = arith.constant 0 : i32
    return %c0_i32, %c0_i32_0, %c0_i32_1 : i32, i32, i32
  }
  func.func @transform_8(%arg0: i32) -> (i32, i32, i32) {
    %c0_i32 = arith.constant 0 : i32
    %c0_i32_0 = arith.constant 0 : i32
    %c0_i32_1 = arith.constant 0 : i32
    %c0_i32_2 = arith.constant 0 : i32
    return %c0_i32, %c0_i32_0, %c0_i32_1 : i32, i32, i32
  }
  func.func @transform_9(%arg0: i32) -> (i32, i32) {
    %c0_i32 = arith.constant 0 : i32
    %c0_i32_0 = arith.constant 0 : i32
    %c0_i32_1 = arith.constant 0 : i32
    return %c0_i32, %c0_i32_0 : i32, i32
  }
  func.func @transform_10(%arg0: i32) -> (i32, i32, i32) {
    %c0_i32 = arith.constant 0 : i32
    %c0_i32_0 = arith.constant 0 : i32
    %c0_i32_1 = arith.constant 0 : i32
    %c0_i32_2 = arith.constant 0 : i32
    return %c0_i32, %c0_i32_0, %c0_i32_1 : i32, i32, i32
  }
  func.func @transform_11(%arg0: i32) -> (i32, i32, i32) {
    %c0_i32 = arith.constant 0 : i32
    %c0_i32_0 = arith.constant 0 : i32
    %c0_i32_1 = arith.constant 0 : i32
    %c0_i32_2 = arith.constant 0 : i32
    return %c0_i32, %c0_i32_0, %c0_i32_1 : i32, i32, i32
  }
  func.func @transform_12(%arg0: i32) -> (i32, i32) {
    %c0_i32 = arith.constant 0 : i32
    %c0_i32_0 = arith.constant 0 : i32
    %c0_i32_1 = arith.constant 0 : i32
    return %c0_i32, %c0_i32_0 : i32, i32
  }
  func.func @transform_13(%arg0: i32) -> (i32, i32, i32) {
    %c0_i32 = arith.constant 0 : i32
    %c0_i32_0 = arith.constant 0 : i32
    %c0_i32_1 = arith.constant 0 : i32
    return %arg0, %c0_i32, %c0_i32_0 : i32, i32, i32
  }
}

</mosaic_0001>

<bundles_post_ra>
// kernel: tile.23
= control target key start
LH: loop header
LB: loop body
LE: loop exit
PB: predicated region body
PF: predicated region fallthrough
CT: control target
= control target key end

     0   :  { %s22_s0 = inlined_call_operand.vmem [shape: f32[8], index: 0, kind: input, shape index: {}]   ;;  %s23_s1 = inlined_call_operand.vmem [shape: f32[8,8], index: 1, kind: output, shape index: {}]  }
   0x1   :  { %v4_v0 = vld [vmem:[%s22_s0] ss:$0 sm:$0xff] }
   0x2   :  { %5 = vst [vmem:[%s23_s1] sm:$0xff] %v4_v0 }

// kernel: tile.24
= control target key start
LH: loop header
LB: loop body
LE: loop exit
PB: predicated region body
PF: predicated region fallthrough
CT: control target
= control target key end

     0   :  { %s67_s10 = smov 56   ;;  %s68_s11 = smov 40   ;;  %vm3_vm0 = vcmask 64512   ;;  %vm9_vm1 = vcmask 523712   ;;  %vm15_vm2 = vcmask 458112   ;;  %vm21_vm3 = vcmask 392512   ;;  %s111_s0 = inlined_call_operand.vmem [shape: f32[8,8], index: 0, kind: input, shape index: {}]   ;;  %s112_s1 = inlined_call_operand.vmem [shape: f32[1,64], index: 1, kind: output, shape index: {}]  }
   0x1   :  { %v53_v0 = vld [vmem:[%s111_s0 + $0x7] sm:$0x1]   ;;  %v55_v1 = vld [vmem:[%s111_s0 + $0x5] sm:$0x1]   ;;  %v54_v2 = vld [vmem:[%s111_s0 + $0x6] sm:$0x1]  }
   0x2   :  { %7 = vrot.lane.b32.xlu0 %v53_v0, %s67_s10  ;;  %19 = vrot.lane.b32.xlu1 %v55_v1, %s68_s11  ;;  %v56_v3 = vld [vmem:[%s111_s0 + $0x4] sm:$0x1]   ;;  %v2_v4 = vld [vmem:[%s111_s0] sm:$0x1]   ;;  %s69_s18 = smov 48   ;;  %s70_s19 = smov 32  }
   0x3   :  { %4 = vst.msk [vmem:[#allocation0] sm:$0x1] %vm3_vm0, %v2_v4   ;;  %v57_v5 = vld [vmem:[%s111_s0 + $0x3] sm:$0x1]   ;;  %v58_v6 = vld [vmem:[%s111_s0 + $0x2] sm:$0x1]  }
   0x4   :  { %s71_s24 = smov 24   ;;  %s72_s25 = smov 16   ;;  %v59_v7 = vld [vmem:[%s111_s0 + $0x1] sm:$0x1]   ;;  %vm27_vm4 = vcmask 326912   ;;  %vm33_vm5 = vcmask 261312  }
   0x5   :  { %s73_s0 = smov 8   ;;  %vm39_vm6 = vcmask 195712   ;;  %vm45_vm7 = vcmask 130112  }
   0x6   :  { %13 = vrot.lane.b32.xlu0 %v54_v2, %s69_s18  ;;  %25 = vrot.lane.b32.xlu1 %v56_v3, %s70_s19 }
   0xa   :  { %31 = vrot.lane.b32.xlu0 %v57_v5, %s71_s24  ;;  %37 = vrot.lane.b32.xlu1 %v58_v6, %s72_s25 }
   0xe   :  { %43 = vrot.lane.b32.xlu0 %v59_v7, %s73_s0 }
  0x74   :  { %v8_v8 = vpop.permute.xlu0 %7   ;;  %v20_v9 = vpop.permute.xlu1 %19  }
  0x75   :  { %10 = vst.msk [vmem:[#allocation0] sm:$0x1] %vm9_vm1, %v8_v8  }
  0x78   :  { %v14_v10 = vpop.permute.xlu0 %13   ;;  %v26_v11 = vpop.permute.xlu1 %25  }
  0x79   :  { %16 = vst.msk [vmem:[#allocation0] sm:$0x1] %vm15_vm2, %v14_v10  }
  0x7a   :  { %22 = vst.msk [vmem:[#allocation0] sm:$0x1] %vm21_vm3, %v20_v9  }
  0x7b   :  { %28 = vst.msk [vmem:[#allocation0] sm:$0x1] %vm27_vm4, %v26_v11  }
  0x7c   :  { %v32_v12 = vpop.permute.xlu0 %31   ;;  %v38_v13 = vpop.permute.xlu1 %37  }
  0x7d   :  { %34 = vst.msk [vmem:[#allocation0] sm:$0x1] %vm33_vm5, %v32_v12  }
  0x7e   :  { %40 = vst.msk [vmem:[#allocation0] sm:$0x1] %vm39_vm6, %v38_v13  }
  0x80   :  { %v44_v14 = vpop.permute.xlu0 %43  }
  0x81   :  { %46 = vst.msk [vmem:[#allocation0] sm:$0x1] %vm45_vm7, %v44_v14  }
  0x88   :  { %v50_v15 = vld [vmem:[#allocation0] sm:$0x1] }
  0x89   :  { %52 = vst [vmem:[%s112_s1] sm:$0x1] %v50_v15 }

// kernel: tile.28
= control target key start
LH: loop header
LB: loop body
LE: loop exit
PB: predicated region body
PF: predicated region fallthrough
CT: control target
= control target key end

     0   :  { %s22_s0 = inlined_call_operand.vmem [shape: f32[16], index: 0, kind: input, shape index: {}]   ;;  %s23_s1 = inlined_call_operand.vmem [shape: f32[4,16], index: 1, kind: output, shape index: {}]  }
   0x1   :  { %v4_v0 = vld [vmem:[%s22_s0] ss:$0 sm:$0xff] }
   0x2   :  { %5 = vst [vmem:[%s23_s1] sm:$0xf] %v4_v0 }

// kernel: tile.29
= control target key start
LH: loop header
LB: loop body
LE: loop exit
PB: predicated region body
PF: predicated region fallthrough
CT: control target
= control target key end

     0   :  { %vm7_vm0 = vcmask 130048   ;;  %s37_s8 = smov 16   ;;  %s38_s9 = smov 32   ;;  %vm13_vm1 = vcmask 523648   ;;  %vm19_vm2 = vcmask 392448   ;;  %vm25_vm3 = vcmask 261248   ;;  %s55_s0 = inlined_call_operand.vmem [shape: f32[4,16], index: 0, kind: input, shape index: {}]   ;;  %s56_s1 = inlined_call_operand.vmem [shape: f32[1,64], index: 1, kind: output, shape index: {}]  }
   0x1   :  { %v4_v0 = vld [vmem:[%s55_s0] sm:$0xf]  ;;  %s36_s0 = smov 48  }
   0x2   :  { %5 = vst [vmem:[#allocation1] sm:$0xf] %v4_v0 }
   0x9   :  { %v10_v1 = vld [vmem:[#allocation1 + $0x3] sm:$0x1]   ;;  %v22_v2 = vld [vmem:[#allocation1 + $0x1] sm:$0x1]   ;;  %v6_v3 = vld [vmem:[#allocation1] sm:$0x1]  }
   0xa   :  { %11 = vrot.lane.b32.xlu0 %v10_v1, %s36_s0  ;;  %23 = vrot.lane.b32.xlu1 %v22_v2, %s37_s8  ;;  %v16_v4 = vld [vmem:[#allocation1 + $0x2] sm:$0x1]   ;;  %8 = vst.msk [vmem:[#allocation0] sm:$0x1] %vm7_vm0, %v6_v3  }
   0xe   :  { %17 = vrot.lane.b32.xlu0 %v16_v4, %s38_s9 }
  0x7c   :  { %v12_v5 = vpop.permute.xlu0 %11   ;;  %v24_v6 = vpop.permute.xlu1 %23  }
  0x7d   :  { %14 = vst.msk [vmem:[#allocation0] sm:$0x1] %vm13_vm1, %v12_v5  }
  0x80   :  { %v18_v7 = vpop.permute.xlu0 %17  }
  0x81   :  { %20 = vst.msk [vmem:[#allocation0] sm:$0x1] %vm19_vm2, %v18_v7  }
  0x82   :  { %26 = vst.msk [vmem:[#allocation0] sm:$0x1] %vm25_vm3, %v24_v6  }
  0x89   :  { %v30_v8 = vld [vmem:[#allocation0] sm:$0x1] }
  0x8a   :  { %32 = vst [vmem:[%s56_s1] sm:$0x1] %v30_v8 }

// kernel: autoencoder_forward.1
= control target key start
LH: loop header
LB: loop body
LE: loop exit
PB: predicated region body
PF: predicated region fallthrough
CT: control target
= control target key end

     0   :  { %18 = vsyncpa [#allocation3], 0  ;;  %s3826_s0 = inlined_call_operand.vmem [shape: f32[2,16,16], index: 0, kind: input, shape index: {}]   ;;  %s3827_s1 = inlined_call_operand.vmem [shape: f32[3,8,16], index: 1, kind: input, shape index: {}]   ;;  %s3828_s2 = inlined_call_operand.vmem [shape: f32[3,16,64], index: 2, kind: input, shape index: {}]   ;;  %s3829_s3 = inlined_call_operand.vmem [shape: f32[1,64], index: 3, kind: input, shape index: {}]   ;;  %s3830_s4 = inlined_call_operand.vmem [shape: f32[3,4,8], index: 4, kind: input, shape index: {}]   ;;  %s3831_s5 = inlined_call_operand.vmem [shape: f32[3,64,64], index: 5, kind: input, shape index: {}]   ;;  %s3832_s6 = inlined_call_operand.vmem [shape: f32[1,64], index: 6, kind: input, shape index: {}]   ;;  %s3833_s7 = inlined_call_operand.vmem [shape: f32[3,8,4], index: 7, kind: input, shape index: {}]   ;;  %s3834_s8 = inlined_call_operand.vmem [shape: f32[3,64,64], index: 8, kind: input, shape index: {}]   ;;  %s3835_s9 = inlined_call_operand.vmem [shape: f32[1,64], index: 9, kind: input, shape index: {}]   ;;  %s3836_s10 = inlined_call_operand.vmem [shape: f32[3,16,8], index: 10, kind: input, shape index: {}]   ;;  %s3837_s11 = inlined_call_operand.vmem [shape: f32[3,64,16], index: 11, kind: input, shape index: {}]   ;;  %s3838_s12 = inlined_call_operand.vmem [shape: f32[1,16], index: 12, kind: input, shape index: {}]   ;;  %s3839_s13 = inlined_call_operand.hbm [shape: f32[2,16,16], index: 13, kind: output, shape index: {}]  }
   0x1   :  { %20 = vsyncpa [#allocation3 + $0x1], 0  ;;  %s3325_s25 = smov 0   ;;  %s3327_s26 = smov 0  }
   0x2   :  { %s3329_s27 = smov 0   ;;  %s3331_s28 = smov 0  }
   0x3 LB: > { %3844 = sst [smem:[#allocation5_spill]] %s3243_s27  ;;  %s3346_s29 = sadd.s32 4294967295, %s3247_s28   ;;  %s3247_s28 = sphi %s3331_s28, %s3851_s28   ;;  %s3243_s27 = sphi %s3329_s27, %s3853_s27   ;;  %s3239_s26 = sphi %s3327_s26, %s3855_s26   ;;  %s3235_s25 = sphi %s3325_s25, %s3854_s25  }
   0x4   : > { %s2497_s30 = sadd.s32 4294967294, %s3247_s28   ;;  %s3350_s14 = sadd.s32 1, %s3247_s28  }
   0x5   : > { %3845 = sst [smem:[#allocation6_spill]] %s3350_s14  ;;  %s311_s15 = sadd.s32 1, %s3243_s27 }
   0x6   : > { %s308_s16 = ssub.s32 %s3247_s28, %s3350_s14  ;;  %p321_p0 = scmp.ne.s32.totalorder %s3243_s27, %s3239_s26 }
   0x7   : > { %p309_p1 = scmp.eq.s32.totalorder %s308_s16, 0  ;;  %p322_p2 = scmp.eq.s32.totalorder %s3346_s29, 1 }
   0x8   : > { %p327_p3 = scmp.ne.s32.totalorder %s3239_s26, %s3235_s25  ;;  %p328_p4 = scmp.eq.s32.totalorder %s2497_s30, 1 }
   0x9   : > { %s3361_s17 = scalar_select %p309_p1, %s3243_s27, %s311_s15  }
   0xa   : > { %p3363_p5 = por %p322_p2, %p321_p0  ;;  %p3367_p6 = por %p328_p4, %p327_p3 }
   0xb   : > { %3846 = sst [smem:[#allocation7_spill]] %s3361_s17  ;;  %p2500_p7 = scmp.ge.s32.totalorder %s3247_s28, 1 }
   0xc   : > { %s3848_s19 = scalar_select %p3367_p6, 1, 0 }
   0xd   : > { %p390_p8 = scmp.lt.s32.totalorder %s3247_s28, 3 }
   0xe   : > { %3849 = sst [smem:[#allocation8_spill]] %s3848_s19 }
   0xf   : > { %p391_p9 = pnand %p2500_p7, %p390_p8 }
  0x10   : > { %p434_p10 = scmp.lt.s32.totalorder (!%p391_p9), %s3346_s29, 1  ;;  %v3249_v0 = vmov (!%p391_p9), 0.0|0.0   ;;  %vm3250_vm0 = vmmov (!%p391_p9), 0   ;;  %v3251_v1 = vmov (!%p391_p9), 0.0   ;;  %v2507_v2 = vld [vmem:[%s3828_s2 + $0x10] sm:$0xff] (!%p391_p9)  ;;  %v2508_v3 = vld [vmem:[%s3828_s2 + $0x18] sm:$0xff] (!%p391_p9) }
  0x11   : > { %394 = sbr.rel (%p391_p9) target bundleno = 2509 (0x9cd), region = 72  ;;  %2991 = vmatprep.subr.bf16.mxu0 (!%p391_p9), %v3249_v0  ;;  %2994 = vmatprep.subr.bf16.mxu1 (!%p391_p9), %v3249_v0  ;;  %v516_v4 = vld [vmem:[%s3828_s2] sm:$0xff] (!%p391_p9)  ;;  %v517_v7 = vld [vmem:[%s3828_s2 + $0x8] sm:$0xff] (!%p391_p9)  ;;  %vm442_vm1 = vcmask (!%p391_p9), 130048   ;;  %v2998_v11 = vpack.c.bf16 (!%p391_p9), %v2508_v3, %v2507_v2  ;;  %v2511_v17 = vld [vmem:[%s3827_s1 + $0x10] sm:$0xff] (!%p391_p9)  ;;  %vm904_vm2 = vcmask (!%p391_p9), 64512  }
  0x12   : > { %2737 = vmatprep.mubr.msk.f32.mxu0 (!%p391_p9), %vm3250_vm0, %v3251_v1  ;;  %2744 = vmatprep.mubr.msk.f32.mxu1 (!%p391_p9), %vm3250_vm0, %v3251_v1  ;;  %v441_v9 = vld [vmem:[%s3827_s1] sm:$0xff] (!%p391_p9)  ;;  %v2505_v10 = vld [vmem:[%s3827_s1 + $0x8] sm:$0xff] (!%p391_p9)  ;;  %v3001_v12 = vpack.c.bf16 (!%p391_p9), %v517_v7, %v516_v4  ;;  %v2522_v39 = vld [vmem:[%s3831_s5 + $0x50] sm:$0xff] (!%p391_p9)  ;;  %vm1070_vm3 = vcmask (!%p391_p9), 523264   ;;  %vm1389_vm4 = vcmask (!%p391_p9), 1043456   ;;  %vm1385_vm5 = vcmask (!%p391_p9), 31744  }
  0x13   : > { %v2513_v18 = vld [vmem:[%s3828_s2 + $0x20] sm:$0xff] (!%p391_p9)  ;;  %v2514_v19 = vld [vmem:[%s3828_s2 + $0x28] sm:$0xff] (!%p391_p9)  ;;  %v2523_v40 = vld [vmem:[%s3831_s5 + $0x58] sm:$0xff] (!%p391_p9)  ;;  %s431_s19 = sand.u32 (!%p391_p9), 1, %s3239_s26   ;;  %s2609_s16 = sshll.u32 (!%p391_p9), %s3346_s29, 8 }
  0x14   : > { %v3007_v20 = vpack.c.bf16 (!%p391_p9), %v2514_v19, %v2513_v18  ;;  %v2516_v29 = vld [vmem:[%s3829_s3] ss:$0 sm:$0xff] (!%p391_p9)  ;;  %v2521_v34 = vld [vmem:[%s3831_s5 + $0x48] sm:$0xff] (!%p391_p9)  ;;  %v2518_v36 = vld [vmem:[%s3830_s4 + $0x4] sm:$0xf] (!%p391_p9)  ;;  %v3013_v41 = vpack.c.bf16 (!%p391_p9), %v2523_v40, %v2522_v39  ;;  %s3779_s22 = scalar_lea.hbm (!%p391_p9), %s3839_s13, %s2609_s16  ;;  %s3252_s23 = smov (!%p391_p9), [#allocation2]  }
  0x15   : > { %v2520_v33 = vld [vmem:[%s3831_s5 + $0x40] sm:$0xff] (!%p391_p9)  ;;  %v2525_v43 = vld [vmem:[%s3831_s5 + $0x68] sm:$0xff] (!%p391_p9)  ;;  %v2526_v45 = vld [vmem:[%s3831_s5 + $0x70] sm:$0xff] (!%p391_p9)  ;;  %s3189_s27 = sshll.u32 (!%p391_p9), %s3252_s23, 4  ;;  %s3190_s27 = int_to_ptr.vmem [resolvable:$false] %s3189_s27 }
  0x16   : > { %v903_v37 = vld [vmem:[%s3830_s4] sm:$0xf] (!%p391_p9)  ;;  %v3010_v38 = vpack.c.bf16 (!%p391_p9), %v2521_v34, %v2520_v33  ;;  %v2527_v46 = vld [vmem:[%s3831_s5 + $0x78] sm:$0xff] (!%p391_p9)  ;;  %v979_v49 = vld [vmem:[%s3831_s5 + $0x8] sm:$0xff] (!%p391_p9)  ;;  %s3191_s14 = scalar_lea.vmem (!%p391_p9), %s3190_s27, 512 }
  0x17   : > { %v2524_v42 = vld [vmem:[%s3831_s5 + $0x60] sm:$0xff] (!%p391_p9)  ;;  %v3019_v47 = vpack.c.bf16 (!%p391_p9), %v2527_v46, %v2526_v45  ;;  %v980_v51 = vld [vmem:[%s3831_s5 + $0x10] sm:$0xff] (!%p391_p9)  ;;  %v981_v52 = vld [vmem:[%s3831_s5 + $0x18] sm:$0xff] (!%p391_p9) }
  0x18   : > { %s435_s20 = scalar_select %p434_p10, %s3346_s29, 1  ;;  %v3016_v44 = vpack.c.bf16 %v2525_v43, %v2524_v42  ;;  %v978_v48 = vld [vmem:[%s3831_s5] sm:$0xff]  ;;  %v3025_v57 = vpack.c.bf16 %v981_v52, %v980_v51  ;;  %v983_v59 = vld [vmem:[%s3831_s5 + $0x28] sm:$0xff]  ;;  %v984_v61 = vld [vmem:[%s3831_s5 + $0x30] sm:$0xff] }
  0x19   : > { %v3022_v50 = vpack.c.bf16 %v979_v49, %v978_v48  ;;  %v982_v58 = vld [vmem:[%s3831_s5 + $0x20] sm:$0xff]  ;;  %v985_v62 = vld [vmem:[%s3831_s5 + $0x38] sm:$0xff]  ;;  %v2530_v2 = vld [vmem:[%s3830_s4 + $0x8] sm:$0xf]  ;;  %s3785_s29 = scalar_lea.sflag [#allocation3], %s431_s19 }
  0x1a   : > { %s2608_s21 = sshll.u32 %s435_s20, 4  ;;  %v3028_v60 = vpack.c.bf16 %v983_v59, %v982_v58  ;;  %v3031_v63 = vpack.c.bf16 %v985_v62, %v984_v61  ;;  %v2532_v3 = vld [vmem:[%s3831_s5 + $0x80] sm:$0xff]  ;;  %v2533_v4 = vld [vmem:[%s3831_s5 + $0x88] sm:$0xff]  ;;  %v2535_v7 = vld [vmem:[%s3831_s5 + $0x98] sm:$0xff] }
  0x1b   : > { %s438_s24 = scalar_lea.vmem %s3826_s0, %s2608_s21  ;;  %v1384_v40 = vld [vmem:[%s3833_s7] sm:$0xff]  ;;  %v2548_v42 = vld [vmem:[%s3834_s8 + $0x48] sm:$0xff]  ;;  %v2549_v45 = vld [vmem:[%s3834_s8 + $0x50] sm:$0xff] }
  0x1c   : > { %v439_v5 = vld [vmem:[%s438_s24] sm:$0xff]  ;;  %v440_v6 = vld [vmem:[%s438_s24 + $0x8] sm:$0xff]  ;;  %v2550_v46 = vld [vmem:[%s3834_s8 + $0x58] sm:$0xff]  ;;  %s2501_s24 = sshll.u32 %s431_s19, 4 }
  0x1d   : > { %v2992_v8 = vpack.c.bf16 %v440_v6, %v439_v5  ;;  %v2534_v5 = vld [vmem:[%s3831_s5 + $0x90] sm:$0xff]  ;;  %v3034_v6 = vpack.c.bf16 %v2533_v4, %v2532_v3  ;;  %v2544_v43 = vld [vmem:[%s3833_s7 + $0x8] sm:$0xff]  ;;  %v2551_v48 = vld [vmem:[%s3834_s8 + $0x60] sm:$0xff]  ;;  %s433_s30 = scalar_lea.vmem [#allocation2], %s2501_s24 }
  0x1e   : > { %v2552_v49 = vld [vmem:[%s3834_s8 + $0x68] sm:$0xff]  ;;  %v2553_v51 = vld [vmem:[%s3834_s8 + $0x70] sm:$0xff]  ;;  %v2554_v52 = vld [vmem:[%s3834_s8 + $0x78] sm:$0xff]  ;;  %s2435_s15 = sshll.u32 %s433_s30, 4  ;;  %s3781_s15 = int_to_ptr.vmem [resolvable:$true] %s2435_s15 }
  0x1f   : > { %2993 = vmatpush3.bf16.msra.mxu0 %v2992_v8  ;;  %2996 = vmatpush3.bf16.msra.mxu1 %v2992_v8  ;;  %v2562_v62 = vld [vmem:[%s3834_s8 + $0x90] sm:$0xff]  ;;  %v2564_v3 = vld [vmem:[%s3834_s8 + $0xa0] sm:$0xff]  ;;  %v2565_v4 = vld [vmem:[%s3834_s8 + $0xa8] sm:$0xff]  ;;  %s3185_s17 = scalar_lea.vmem %s3781_s15, 256  ;;  %p3192_p0 = scmp.lt.s32.totalorder %s3781_s15, %s3190_s27 }
  0x20   : > { %2997 = vmatprep.subr.bf16.mxu0 %v3249_v0  ;;  %3000 = vmatprep.subr.bf16.mxu1 %v3249_v0  ;;  %p3186_p11 = scmp.ne.s32.totalorder %s3781_s15, %s3185_s17  ;;  %p3193_p1 = scmp.lt.s32.totalorder %s3191_s14, %s3185_s17 }
  0x22   : > { %2738 = vmatmul.mubr.msk.f32.vlgmr.msra.gmra.mrb[0].mxu0 %vm442_vm1, %v441_v9  ;;  %2745 = vmatmul.mubr.msk.f32.vlgmr.msra.gmra.mrb[0].mxu1 %vm442_vm1, %v2505_v10  ;;  %v2536_v9 = vld [vmem:[%s3831_s5 + $0xa0] sm:$0xff]  ;;  %v2537_v10 = vld [vmem:[%s3831_s5 + $0xa8] sm:$0xff]  ;;  %p3187_p12 = pnand %p3186_p11, %p3363_p5  ;;  %p3194_p2 = por %p3193_p1, %p3192_p0 }
  0x23   : > { %2999 = vmatpush3.bf16.msra.mxu0 %v2998_v11  ;;  %3002 = vmatpush3.bf16.msra.mxu1 %v3001_v12  ;;  %v3040_v11 = vpack.c.bf16 %v2537_v10, %v2536_v9  ;;  %v2538_v12 = vld [vmem:[%s3831_s5 + $0xb0] sm:$0xff] }
  0x24   : > { %2751 = vmatprep.mubr.msk.f32.mxu0 %vm3250_vm0, %v3251_v1  ;;  %2758 = vmatprep.mubr.msk.f32.mxu1 %vm3250_vm0, %v3251_v1  ;;  %p3188_p13 = pneg %p3187_p12 }
  0x25   : > { %3003 = vmatprep.subr.bf16.mxu0 %v3249_v0  ;;  %3006 = vmatprep.subr.bf16.mxu1 %v3249_v0 }
  0x26   : > { %p3195_p3 = pnand %p3194_p2, %p3188_p13 }
  0xf5   : > { %v512_v13 = vpop.f32.mrb[0].mxu0  ;;  %v589_v14 = vpop.f32.mrb[0].mxu1 }
  0xf6   : > { %v2746_v15 = vpop.f32.mrb[1].mxu1  ;;  %2752 = vmatmul.mubr.msk.f32.vlgmr.msra.gmra.mrb[2].mxu0 %vm442_vm1, %v589_v14  ;;  %2759 = vmatmul.mubr.msk.f32.vlgmr.msra.gmra.mrb[2].mxu1 %vm442_vm1, %v512_v13  ;;  %v2739_v16 = vpop.f32.mrb[1].mxu0  ;;  %v2539_v13 = vld [vmem:[%s3831_s5 + $0xb8] sm:$0xff] }
  0xf7   : > { %3005 = vmatpush3.bf16.msra.mxu0 %v2992_v8  ;;  %2765 = vmatprep.mubr.msk.f32.mxu0 %vm3250_vm0, %v3251_v1  ;;  %v3037_v8 = vpack.c.bf16 %v2535_v7, %v2534_v5  ;;  %v3043_v14 = vpack.c.bf16 %v2539_v13, %v2538_v12  ;;  %v3076_v5 = vpack.c.bf16 %v2565_v4, %v2564_v3  ;;  %v2598_v3 = vld [vmem:[%s3837_s11 + $0xb0] sm:$0xff]  ;;  %v2599_v4 = vld [vmem:[%s3837_s11 + $0xb8] sm:$0xff] }
  0xf8   : > { %2772 = vmatprep.mubr.msk.f32.mxu1 %vm3250_vm0, %v3251_v1  ;;  %2775 = vmatprep.subr.mxu0 %v3251_v1 }
  0xf9   : > { %3008 = vmatpush3.bf16.msra.mxu1 %v3007_v20 }
  0xfa   : > { %2766 = vmatmul.mubr.msk.f32.vlgmr.msra.gmra.mrb[4].mxu0 %vm442_vm1, %v2511_v17  ;;  %2780 = vmatprep.subr.mxu1 %v3251_v1 }
  0xfb   : > { %2777 = vmatprep.mubr.msk.f32.mxu0 %vm3250_vm0, %v3251_v1 }
 0x1c9   : > { %v665_v21 = vpop.f32.mrb[2].mxu0  ;;  %v738_v22 = vpop.f32.mrb[2].mxu1 }
 0x1ca   : > { %v739_v23 = vadd.f32 %v738_v22, %v665_v21  ;;  %v2753_v24 = vpop.f32.mrb[3].mxu0  ;;  %v2760_v25 = vpop.f32.mrb[3].mxu1  ;;  %v1463_v22 = vld [vmem:[%s3834_s8] sm:$0xff] }
 0x1cb   : > { %v1465_v25 = vld [vmem:[%s3834_s8 + $0x10] sm:$0xff] }
 0x1cd   : > { %v813_v26 = vpop.f32.mrb[4].mxu0 }
 0x1ce   : > { %v2767_v27 = vpop.f32.mrb[5].mxu0  ;;  %2773 = vmatmul.mubr.msk.f32.vlgmr.msra.gmra.mrb[4].mxu1 %vm442_vm1, %v813_v26  ;;  %v1466_v26 = vld [vmem:[%s3834_s8 + $0x18] sm:$0xff] }
 0x1cf   : > { %2782 = vmatprep.mubr.msk.f32.mxu1 %vm3250_vm0, %v3251_v1  ;;  %v3061_v27 = vpack.c.bf16 %v1466_v26, %v1465_v25  ;;  %v2572_v25 = vld [vmem:[%s3836_s10 + $0x10] sm:$0xff] }
 0x2a1   : > { %v889_v28 = vpop.f32.mrb[4].mxu1 }
 0x2a2   : > { %v893_v30 = vadd.f32 %v889_v28, %v739_v23  ;;  %v2774_v31 = vpop.f32.mrb[5].mxu1  ;;  %v1464_v23 = vld [vmem:[%s3834_s8 + $0x8] sm:$0xff]  ;;  %v1467_v28 = vld [vmem:[%s3834_s8 + $0x20] sm:$0xff] }
 0x2a3   : > { %v3058_v24 = vpack.c.bf16 %v1464_v23, %v1463_v22  ;;  %v1469_v31 = vld [vmem:[%s3834_s8 + $0x30] sm:$0xff]  ;;  %v2577_v22 = vld [vmem:[%s3837_s11 + $0x48] sm:$0xff] }
 0x2a4   : > { %v901_v32 = vadd.f32 %v2516_v29, %v893_v30  ;;  %v1468_v29 = vld [vmem:[%s3834_s8 + $0x28] sm:$0xff] }
 0x2a5   : > { %v3064_v30 = vpack.c.bf16 %v1468_v29, %v1467_v28  ;;  %v2578_v28 = vld [vmem:[%s3837_s11 + $0x50] sm:$0xff]  ;;  %v2579_v29 = vld [vmem:[%s3837_s11 + $0x58] sm:$0xff] }
 0x2a6   : > { %v902_v35 = vmax.f32 %v901_v32, 0.0  ;;  %v1470_v32 = vld [vmem:[%s3834_s8 + $0x38] sm:$0xff] }
 0x2a7   : > { %v3067_v33 = vpack.c.bf16 %v1470_v32, %v1469_v31  ;;  %v3085_v31 = vpack.c.bf16 %v2579_v29, %v2578_v28  ;;  %v2580_v32 = vld [vmem:[%s3837_s11 + $0x60] sm:$0xff] }
 0x2a8   : > { %2776 = vmatpush3.msra.mxu0 %v902_v35  ;;  %2781 = vmatpush3.msra.mxu1 %v902_v35 }
 0x2a9   : > { %2783 = vmatmul.mubr.msk.f32.vlgmr.msra.gmra.mrb[6].mxu1 %vm904_vm2, %v2518_v36  ;;  %2778 = vmatmul.mubr.msk.f32.vlgmr.msra.gmra.mrb[6].mxu0 %vm904_vm2, %v903_v37 }
 0x2aa   : > { %3009 = vmatprep.subr.bf16.mxu0 %v3249_v0  ;;  %2801 = vmatprep.mubr.msk.f32.mxu0 %vm3250_vm0, %v3251_v1 }
 0x2ab   : > { %3011 = vmatpush3.bf16.msra.mxu0 %v3010_v38  ;;  %3033 = vmatprep.subr.bf16.mxu1 %v3249_v0 }
 0x2ac   : > { %3012 = vmatprep.subr.bf16.mxu0 %v3249_v0  ;;  %2844 = vmatprep.mubr.msk.f32.mxu1 %vm3250_vm0, %v3251_v1 }
 0x2ad   : > { %3035 = vmatpush3.bf16.msra.mxu1 %v3034_v6  ;;  %v2567_v6 = vld [vmem:[%s3834_s8 + $0xb8] sm:$0xff] }
 0x2ae   : > { %3036 = vmatprep.subr.bf16.mxu1 %v3249_v0 }
 0x2af   : > { %3014 = vmatpush3.bf16.msra.mxu0 %v3013_v41  ;;  %v2547_v41 = vld [vmem:[%s3834_s8 + $0x40] sm:$0xff] }
 0x2b0   : > { %3015 = vmatprep.subr.bf16.mxu0 %v3249_v0 }
 0x2b1   : > { %3038 = vmatpush3.bf16.msra.mxu1 %v3037_v8 }
 0x2b2   : > { %3039 = vmatprep.subr.bf16.mxu1 %v3249_v0 }
 0x2b3   : > { %3017 = vmatpush3.bf16.msra.mxu0 %v3016_v44  ;;  %v3046_v44 = vpack.c.bf16 %v2548_v42, %v2547_v41 }
 0x2b4   : > { %3018 = vmatprep.subr.bf16.mxu0 %v3249_v0 }
 0x2b5   : > { %3041 = vmatpush3.bf16.msra.mxu1 %v3040_v11 }
 0x2b6   : > { %3042 = vmatprep.subr.bf16.mxu1 %v3249_v0 }
 0x2b7   : > { %3020 = vmatpush3.bf16.msra.mxu0 %v3019_v47  ;;  %v3049_v47 = vpack.c.bf16 %v2550_v46, %v2549_v45 }
 0x2b8   : > { %3021 = vmatprep.subr.bf16.mxu0 %v3249_v0 }
 0x2b9   : > { %3044 = vmatpush3.bf16.msra.mxu1 %v3043_v14 }
 0x2ba   : > { %3057 = vmatprep.subr.bf16.mxu1 %v3249_v0 }
 0x37c   : > { %v1057_v53 = vpop.f32.mrb[6].mxu1  ;;  %v974_v54 = vpop.f32.mrb[6].mxu0 }
 0x37d   : > { %v2784_v55 = vpop.f32.mrb[7].mxu1  ;;  %2802 = vmatmul.mubr.msk.f32.vlgmr.msra.gmra.mrb[8].mxu0 %vm1070_vm3, %v1057_v53  ;;  %v2779_v56 = vpop.f32.mrb[7].mxu0  ;;  %v3055_v53 = vpack.c.bf16 %v2554_v52, %v2553_v51  ;;  %v1956_v51 = vld [vmem:[%s3837_s11 + $0x28] sm:$0xff] }
 0x37e   : > { %3023 = vmatpush3.bf16.msra.mxu0 %v3022_v50  ;;  %2820 = vmatprep.mubr.msk.f32.mxu0 %vm3250_vm0, %v3251_v1  ;;  %v3052_v50 = vpack.c.bf16 %v2552_v49, %v2551_v48  ;;  %v2560_v56 = vld [vmem:[%s3834_s8 + $0x80] sm:$0xff] }
 0x37f   : > { %3024 = vmatprep.subr.bf16.mxu0 %v3249_v0 }
 0x382   : > { %3026 = vmatpush3.bf16.msra.mxu0 %v3025_v57  ;;  %v2561_v57 = vld [vmem:[%s3834_s8 + $0x88] sm:$0xff] }
 0x383   : > { %3027 = vmatprep.subr.bf16.mxu0 %v3249_v0  ;;  %v3070_v61 = vpack.c.bf16 %v2561_v57, %v2560_v56  ;;  %v2592_v56 = vld [vmem:[%s3837_s11 + $0x80] sm:$0xff]  ;;  %v2593_v57 = vld [vmem:[%s3837_s11 + $0x88] sm:$0xff] }
 0x386   : > { %3029 = vmatpush3.bf16.msra.mxu0 %v3028_v60  ;;  %v2557_v60 = vld [vmem:[%s3833_s7 + $0x10] sm:$0xff] }
 0x387   : > { %3030 = vmatprep.subr.bf16.mxu0 %v3249_v0 }
 0x38a   : > { %3032 = vmatpush3.bf16.msra.mxu0 %v3031_v63  ;;  %v2563_v63 = vld [vmem:[%s3834_s8 + $0x98] sm:$0xff] }
 0x38b   : > { %2823 = vmatprep.subr.mxu0 %v3251_v1 }
 0x38d   : > { %2821 = vmatmul.mubr.msk.f32.vlgmr.msra.gmra.mrb[10].mxu0 %vm1070_vm3, %v974_v54 }
 0x38e   : > { %2824 = vmatpush3.msra.mxu0 %v902_v35  ;;  %2825 = vmatprep.mubr.msk.f32.mxu0 %vm3250_vm0, %v3251_v1  ;;  %v2541_v35 = vld [vmem:[%s3832_s6] ss:$0 sm:$0xff] }
 0x38f   : > { %2847 = vmatprep.subr.mxu0 %v3251_v1 }
 0x391   : > { %2826 = vmatmul.mubr.msk.f32.vlgmr.msra.gmra.mrb[12].mxu0 %vm904_vm2, %v2530_v2  ;;  %v3073_v2 = vpack.c.bf16 %v2563_v63, %v2562_v62  ;;  %v2596_v62 = vld [vmem:[%s3837_s11 + $0xa0] sm:$0xff]  ;;  %v2597_v63 = vld [vmem:[%s3837_s11 + $0xa8] sm:$0xff] }
 0x392   : > { %2849 = vmatprep.mubr.msk.f32.mxu0 %vm3250_vm0, %v3251_v1 }
 0x450   : > { %v1140_v15 = vpop.f32.mrb[8].mxu0 }
 0x451   : > { %v2803_v16 = vpop.f32.mrb[9].mxu0 }
 0x460   : > { %v1213_v17 = vpop.f32.mrb[10].mxu0 }
 0x461   : > { %v1214_v18 = vadd.f32 %v1213_v17, %v1140_v15  ;;  %v2822_v19 = vpop.f32.mrb[11].mxu0  ;;  %v2588_v15 = vld [vmem:[%s3836_s10 + $0x20] sm:$0xff] }
 0x462   : > { %v2569_v17 = vld [vmem:[%s3835_s9] ss:$0 sm:$0xff] }
 0x464   : > { %v1288_v20 = vpop.f32.mrb[12].mxu0 }
 0x465   : > { %v2827_v21 = vpop.f32.mrb[13].mxu0  ;;  %2845 = vmatmul.mubr.msk.f32.vlgmr.msra.gmra.mrb[8].mxu1 %vm1070_vm3, %v1288_v20 }
 0x466   : > { %2892 = vmatprep.mubr.msk.f32.mxu1 %vm3250_vm0, %v3251_v1  ;;  %3059 = vmatpush3.bf16.msra.mxu1 %v3058_v24  ;;  %v2576_v21 = vld [vmem:[%s3837_s11 + $0x40] sm:$0xff]  ;;  %v1869_v24 = vld [vmem:[%s3836_s10 + $0x8] sm:$0xff] }
 0x467   : > { %3060 = vmatprep.subr.bf16.mxu1 %v3249_v0  ;;  %v3081_v26 = vpack.c.bf16 %v2577_v22, %v2576_v21 }
 0x46a   : > { %3062 = vmatpush3.bf16.msra.mxu1 %v3061_v27  ;;  %v2589_v27 = vld [vmem:[%s3836_s10 + $0x28] sm:$0xff] }
 0x46b   : > { %3063 = vmatprep.subr.bf16.mxu1 %v3249_v0 }
 0x46e   : > { %3065 = vmatpush3.bf16.msra.mxu1 %v3064_v30  ;;  %v2573_v30 = vld [vmem:[%s3836_s10 + $0x18] sm:$0xff] }
 0x46f   : > { %3066 = vmatprep.subr.bf16.mxu1 %v3249_v0 }
 0x472   : > { %3068 = vmatpush3.bf16.msra.mxu1 %v3067_v33  ;;  %v2581_v33 = vld [vmem:[%s3837_s11 + $0x68] sm:$0xff] }
 0x538   : > { %v1370_v34 = vpop.f32.mrb[8].mxu1 }
 0x539   : > { %v1374_v36 = vadd.f32 %v1370_v34, %v1214_v18  ;;  %v2846_v37 = vpop.f32.mrb[9].mxu1  ;;  %v3089_v34 = vpack.c.bf16 %v2581_v33, %v2580_v32 }
 0x53b   : > { %v1382_v38 = vadd.f32 %v2541_v35, %v1374_v36  ;;  %v2582_v35 = vld [vmem:[%s3837_s11 + $0x70] sm:$0xff]  ;;  %v2583_v36 = vld [vmem:[%s3837_s11 + $0x78] sm:$0xff] }
 0x53c   : > { %v3093_v37 = vpack.c.bf16 %v2583_v36, %v2582_v35 }
 0x53d   : > { %v1383_v39 = vmax.f32 %v1382_v38, 0.0  ;;  %v1951_v38 = vld [vmem:[%s3837_s11] sm:$0xff] }
 0x53f   : > { %2848 = vmatpush3.msk.msra.mxu0 %vm1389_vm4, %v1383_v39 }
 0x540   : > { %2850 = vmatmul.mubr.msk.f32.vlgmr.msra.gmra.mrb[14].mxu0 %vm1385_vm5, %v1384_v40  ;;  %2852 = vmatprep.subr.mxu0 %v3251_v1 }
 0x541   : > { %2853 = vmatpush3.msk.msra.mxu0 %vm1389_vm4, %v1383_v39  ;;  %2854 = vmatprep.mubr.msk.f32.mxu0 %vm3250_vm0, %v3251_v1 }
 0x542   : > { %3045 = vmatprep.subr.bf16.mxu0 %v3249_v0 }
 0x544   : > { %2855 = vmatmul.mubr.msk.f32.vlgmr.msra.gmra.mrb[16].mxu0 %vm1385_vm5, %v2544_v43  ;;  %v1953_v43 = vld [vmem:[%s3837_s11 + $0x10] sm:$0xff] }
 0x545   : > { %3047 = vmatpush3.bf16.msra.mxu0 %v3046_v44  ;;  %2873 = vmatprep.mubr.msk.f32.mxu0 %vm3250_vm0, %v3251_v1  ;;  %v1954_v44 = vld [vmem:[%s3837_s11 + $0x18] sm:$0xff] }
 0x546   : > { %3048 = vmatprep.subr.bf16.mxu0 %v3249_v0  ;;  %v3101_v49 = vpack.c.bf16 %v1954_v44, %v1953_v43 }
 0x549   : > { %3050 = vmatpush3.bf16.msra.mxu0 %v3049_v47 }
 0x54a   : > { %3051 = vmatprep.subr.bf16.mxu0 %v3249_v0 }
 0x54d   : > { %3053 = vmatpush3.bf16.msra.mxu0 %v3052_v50  ;;  %v1955_v50 = vld [vmem:[%s3837_s11 + $0x20] sm:$0xff] }
 0x54e   : > { %3054 = vmatprep.subr.bf16.mxu0 %v3249_v0  ;;  %v3105_v52 = vpack.c.bf16 %v1956_v51, %v1955_v50 }
 0x551   : > { %3056 = vmatpush3.bf16.msra.mxu0 %v3055_v53  ;;  %v1957_v53 = vld [vmem:[%s3837_s11 + $0x30] sm:$0xff] }
 0x552   : > { %2895 = vmatprep.subr.mxu0 %v3251_v1 }
 0x613   : > { %v1459_v54 = vpop.f32.mrb[14].mxu0 }
 0x614   : > { %v2851_v55 = vpop.f32.mrb[15].mxu0  ;;  %2893 = vmatmul.mubr.msk.f32.vlgmr.msra.gmra.mrb[10].mxu1 %vm1070_vm3, %v1459_v54  ;;  %v1958_v54 = vld [vmem:[%s3837_s11 + $0x38] sm:$0xff] }
 0x615   : > { %v3109_v55 = vpack.c.bf16 %v1958_v54, %v1957_v53 }
 0x617   : > { %v1542_v58 = vpop.f32.mrb[16].mxu0 }
 0x618   : > { %v2856_v59 = vpop.f32.mrb[17].mxu0  ;;  %2874 = vmatmul.mubr.msk.f32.vlgmr.msra.gmra.mrb[18].mxu0 %vm1070_vm3, %v1542_v58  ;;  %v3113_v58 = vpack.c.bf16 %v2593_v57, %v2592_v56 }
 0x619   : > { %2896 = vmatpush3.msk.msra.mxu0 %vm1389_vm4, %v1383_v39  ;;  %2897 = vmatprep.mubr.msk.f32.mxu0 %vm3250_vm0, %v3251_v1  ;;  %v1952_v39 = vld [vmem:[%s3837_s11 + $0x8] sm:$0xff]  ;;  %v2594_v59 = vld [vmem:[%s3837_s11 + $0x90] sm:$0xff] }
 0x61a   : > { %3069 = vmatprep.subr.bf16.mxu0 %v3249_v0  ;;  %v3097_v40 = vpack.c.bf16 %v1952_v39, %v1951_v38 }
 0x61c   : > { %2898 = vmatmul.mubr.msk.f32.vlgmr.msra.gmra.mrb[20].mxu0 %vm1385_vm5, %v2557_v60  ;;  %v2595_v60 = vld [vmem:[%s3837_s11 + $0x98] sm:$0xff] }
 0x61d   : > { %3071 = vmatpush3.bf16.msra.mxu0 %v3070_v61  ;;  %2916 = vmatprep.mubr.msk.f32.mxu0 %vm3250_vm0, %v3251_v1  ;;  %v2566_v1 = vld [vmem:[%s3834_s8 + $0xb0] sm:$0xff]  ;;  %v3117_v61 = vpack.c.bf16 %v2595_v60, %v2594_v59 }
 0x61e   : > { %3072 = vmatprep.subr.bf16.mxu0 %v3249_v0  ;;  %v3079_v7 = vpack.c.bf16 %v2567_v6, %v2566_v1  ;;  %v2602_v1 = vld [vmem:[%s3838_s12] ss:$0 sm:$0xff] }
 0x621   : > { %3074 = vmatpush3.bf16.msra.mxu0 %v3073_v2  ;;  %v3121_v2 = vpack.c.bf16 %v2597_v63, %v2596_v62 }
 0x622   : > { %3075 = vmatprep.subr.bf16.mxu0 %v3249_v0 }
 0x625   : > { %3077 = vmatpush3.bf16.msra.mxu0 %v3076_v5  ;;  %v3125_v5 = vpack.c.bf16 %v2599_v4, %v2598_v3 }
 0x626   : > { %3078 = vmatprep.subr.bf16.mxu0 %v3249_v0  ;;  %v1868_v0 = vld [vmem:[%s3836_s10] sm:$0xff] }
 0x627   : > { %2921 = vmatprep.mubr.msk.f32.mxu1 %vm904_vm2, %v1868_v0 }
 0x629   : > { %3080 = vmatpush3.bf16.msra.mxu0 %v3079_v7 }
 0x6e7   : > { %v1697_v8 = vpop.f32.mrb[10].mxu1 }
 0x6e8   : > { %v2894_v9 = vpop.f32.mrb[11].mxu1 }
 0x6eb   : > { %v1624_v10 = vpop.f32.mrb[18].mxu0 }
 0x6ec   : > { %v1698_v11 = vadd.f32 %v1697_v8, %v1624_v10  ;;  %v2875_v12 = vpop.f32.mrb[19].mxu0 }
 0x6ef   : > { %v1772_v13 = vpop.f32.mrb[20].mxu0 }
 0x6f0   : > { %v2899_v14 = vpop.f32.mrb[21].mxu0  ;;  %2917 = vmatmul.mubr.msk.f32.vlgmr.msra.gmra.mrb[22].mxu0 %vm1070_vm3, %v1772_v13 }
 0x6f1   : > { %2969 = vmatprep.mubr.msk.f32.mxu0 %vm904_vm2, %v2588_v15 }
 0x7c3   : > { %v1854_v16 = vpop.f32.mrb[22].mxu0 }
 0x7c4   : > { %v1858_v18 = vadd.f32 %v1854_v16, %v1698_v11  ;;  %v2918_v19 = vpop.f32.mrb[23].mxu0 }
 0x7c6   : > { %v1866_v20 = vadd.f32 %v2569_v17, %v1858_v18 }
 0x7c8   : > { %v1867_v23 = vmax.f32 %v1866_v20, 0.0 }
 0x7ca   : > { %2919 = vmatprep.subr.mxu1 %v1867_v23  ;;  %2967 = vmatprep.subr.mxu0 %v1867_v23 }
 0x7cb   : > { %2920 = vmatpush3.msra.mxu1 %v1867_v23  ;;  %2968 = vmatpush3.msra.mxu0 %v1867_v23 }
 0x7cc   : > { %2922 = vmatmul.mubr.msk.f32.vlgmr.msra.gmra.mrb[12].mxu1 %vm904_vm2, %v1869_v24  ;;  %2924 = vmatprep.subr.mxu1 %v1867_v23 }
 0x7cd   : > { %2925 = vmatpush3.msra.mxu1 %v1867_v23  ;;  %2926 = vmatprep.mubr.msk.f32.mxu1 %vm904_vm2, %v2572_v25 }
 0x7ce   : > { %2970 = vmatmul.mubr.msk.f32.vlgmr.msra.gmra.mrb[24].mxu0 %vm904_vm2, %v2589_v27  ;;  %3082 = vmatprep.subr.bf16.mxu1 %v3081_v26 }
 0x7d0   : > { %2927 = vmatmul.mubr.msk.f32.vlgmr.msra.gmra.mrb[14].mxu1 %vm904_vm2, %v2573_v30 }
 0x7d1   : > { %3084 = vmatpush3.bf16.msra.mxu1 %v3081_v26 }
 0x7d2   : > { %3086 = vmatprep.subr.bf16.mxu1 %v3085_v31 }
 0x7d5   : > { %3088 = vmatpush3.bf16.msra.mxu1 %v3085_v31 }
 0x7d6   : > { %3090 = vmatprep.subr.bf16.mxu1 %v3089_v34 }
 0x7d9   : > { %3092 = vmatpush3.bf16.msra.mxu1 %v3089_v34 }
 0x7da   : > { %3094 = vmatprep.subr.bf16.mxu1 %v3093_v37 }
 0x7dd   : > { %3096 = vmatpush3.bf16.msra.mxu1 %v3093_v37 }
 0x7de   : > { %3098 = vmatprep.subr.bf16.mxu1 %v3097_v40 }
 0x89f   : > { %v2923_v41 = vpop.f32.mrb[12].mxu1 }
 0x8a0   : > { %v1942_v42 = vpop.f32.mrb[13].mxu1 }
 0x8a1   : > { %v2971_v45 = vpop.f32.mrb[24].mxu0 }
 0x8a2   : > { %v2289_v46 = vpop.f32.mrb[25].mxu0 }
 0x8a3   : > { %v2928_v47 = vpop.f32.mrb[14].mxu1 }
 0x8a4   : > { %v2034_v48 = vpop.f32.mrb[15].mxu1 }
 0x8a5   : > { %2945 = vmatprep.mubr.msk.f32.mxu1 %vm1070_vm3, %v2034_v48 }
 0x8a6   : > { %2946 = vmatmul.mubr.msk.f32.vlgmr.msra.gmra.mrb[16].mxu1 %vm1070_vm3, %v2928_v47 }
 0x8a7   : > { %3100 = vmatpush3.bf16.msra.mxu1 %v3097_v40  ;;  %2964 = vmatprep.mubr.msk.f32.mxu1 %vm1070_vm3, %v1942_v42 }
 0x8a8   : > { %3102 = vmatprep.subr.bf16.mxu1 %v3101_v49 }
 0x8ab   : > { %3104 = vmatpush3.bf16.msra.mxu1 %v3101_v49 }
 0x8ac   : > { %3106 = vmatprep.subr.bf16.mxu1 %v3105_v52 }
 0x8af   : > { %3108 = vmatpush3.bf16.msra.mxu1 %v3105_v52 }
 0x8b0   : > { %3110 = vmatprep.subr.bf16.mxu1 %v3109_v55 }
 0x8b3   : > { %3112 = vmatpush3.bf16.msra.mxu1 %v3109_v55 }
 0x8b4   : > { %3114 = vmatprep.subr.bf16.mxu1 %v3113_v58 }
 0x8b6   : > { %2965 = vmatmul.mubr.msk.f32.vlgmr.msra.gmra.mrb[16].mxu1 %vm1070_vm3, %v2923_v41 }
 0x8b7   : > { %3116 = vmatpush3.bf16.msra.mxu1 %v3113_v58  ;;  %2988 = vmatprep.mubr.msk.f32.mxu1 %vm1070_vm3, %v2289_v46 }
 0x8b8   : > { %3118 = vmatprep.subr.bf16.mxu1 %v3117_v61 }
 0x8bb   : > { %3120 = vmatpush3.bf16.msra.mxu1 %v3117_v61 }
 0x8bc   : > { %3122 = vmatprep.subr.bf16.mxu1 %v3121_v2 }
 0x8bf   : > { %3124 = vmatpush3.bf16.msra.mxu1 %v3121_v2 }
 0x8c0   : > { %3126 = vmatprep.subr.bf16.mxu1 %v3125_v5 }
 0x8c3   : > { %3128 = vmatpush3.bf16.msra.mxu1 %v3125_v5 }
 0x8c6   : > { %2989 = vmatmul.mubr.msk.f32.vlgmr.msra.gmra.mrb[16].mxu1 %vm1070_vm3, %v2971_v45 }
 0x999   : > { %v2990_v6 = vpop.f32.mrb[16].mxu1 }
 0x99a   : > { %v2398_v7 = vadd.f32 %v2990_v6, %v2602_v1  ;;  %v2379_v8 = vpop.f32.mrb[17].mxu1 }
 0x99b   : > { %v2397_v9 = vadd.f32 %v2602_v1, %v2379_v8 }
 0x99c   : > { %v2400_v10 = vand.u32 2147483647, %v2398_v7  ;;  %vm2408_vm6 = vcmp.ge.f32.partialorder %v2398_v7, 0.0 }
 0x99d   : > { %v2399_v11 = vand.u32 2147483647, %v2397_v9  ;;  %vm2407_vm7 = vcmp.ge.f32.partialorder %v2397_v9, 0.0 }
 0x99e   : > { %v2402_v12 = vsub.f32 0.0, %v2400_v10 }
 0x99f   : > { %v2401_v13 = vsub.f32 0.0, %v2399_v11 }
 0x9a0   : > { %v2405_v14 = vmul.f32 1.442695, %v2402_v12 }
 0x9a1   : > { %v2403_v0 = vmul.f32 1.442695, %v2401_v13 }
 0x9a2   : > { %3177 = vpow2.f32 %v2405_v14 }
 0x9a3   : > { %3179 = vpow2.f32 %v2403_v0 }
 0x9ac   : > { %v3178_v15 = vpop.eup %3177 }
 0x9ad   : > { %v3180_v16 = vpop.eup %3179  ;;  %v2410_v17 = vadd.f32 1.0, %v3178_v15 }
 0x9ae   : > { %v2409_v18 = vadd.f32 1.0, %v3180_v16 }
 0x9af   : > { %3181 = vrcp.f32 %v2410_v17 }
 0x9b0   : > { %3183 = vrcp.f32 %v2409_v18 }
 0x9b9   : > { %v3182_v19 = vpop.eup %3181 }
 0x9ba   : > { %v3184_v20 = vpop.eup %3183  ;;  %v2416_v21 = vmul.f32 %v3182_v19, %v3178_v15 }
 0x9bb   : > { %v2415_v22 = vmul.f32 %v3184_v20, %v3180_v16 }
 0x9bc   : > { %v2418_v23 = vsel %vm2408_vm6, %v3182_v19, %v2416_v21 }
 0x9bd   : > { %2420 = vst.msk [vmem:[%s433_s30 + $0x8] sm:$0xff] %vm442_vm1, %v2418_v23  ;;  %v2417_v24 = vsel %vm2407_vm7, %v3184_v20, %v2415_v22 }
 0x9be   : > { %2419 = vst.msk [vmem:[%s433_s30] sm:$0xff] %vm442_vm1, %v2417_v24 }
 0x9bf   : > { %3198 = shalt.err (!%p3195_p3)
}
 0x9c0   : > { %s3199_s19 = scalar_lea.hbm %s3779_s22, 256  ;;  %s3203_s16 = scalar_lea.hbm %s3839_s13, 512 }
 0x9c1   : > { %p3200_p4 = scmp.ne.s32.totalorder %s3779_s22, %s3199_s19  ;;  %p3204_p9 = scmp.lt.u32.totalorder %s3779_s22, %s3839_s13 }
 0x9c2   : > { %p3205_p10 = scmp.lt.u32.totalorder %s3203_s16, %s3199_s19  ;;  %p3207_p12 = scmp.lt.u32.totalorder %s3199_s19, %s3779_s22 }
 0x9c3   : > { %p3201_p7 = pnand %p3200_p4, %p3363_p5 }
 0x9c4   : > { %p3206_p11 = por %p3205_p10, %p3204_p9 }
 0x9c5   : > { %p3202_p8 = pneg %p3201_p7 }
 0x9c6   : > { %p3208_p13 = por %p3207_p12, %p3206_p11 }
 0x9c8   : > { %p3209_p0 = pnand %p3208_p13, %p3202_p8 }
 0x9ca   : > { %3212 = shalt.err (!%p3209_p0)
}
 0x9cb   : > { %s3253_s17 = smov 128   ;;  %s3254_s23 = smov 8  }
 0x9cc   : > { %3133 = dma.vmem_to_hbm [thread:$0]  (%p3363_p5), %s3781_s15, 256, %s3779_s22, %s3785_s29, %s3253_s17, %s3253_s17, %s3254_s23  }
 0x9cd PF: > { %p3139_p1 = scmp.ge.s32.totalorder %s3247_s28, 2  ;;  %s2450_s14 = sand.u32 1, %s3235_s25  }
 0x9ce   : > { %s2451_s19 = scalar_lea.sflag [#allocation3], %s2450_s14 }
 0x9cf   : > { %p3136_p2 = pnand %p3139_p1, %p3367_p6 }
 0x9d1   : > { %3230 = dma.done.wait (!%p3136_p2), %s2451_s19, 256  }
 0x9d2   : > { %3232 = vsyncadd (!%p3136_p2), %s2451_s19, 4294967040  ;;  %s3851_s28 = sld [smem:[#allocation6_spill]]  ;;  %s3852_s24 = sld [smem:[#allocation5_spill]] }
 0x9d3   : > { %s3853_s27 = sld [smem:[#allocation7_spill]]  ;;  %s3854_s25 = smov %s3239_s26 }
 0x9d8   : > { %p23_p3 = scmp.ge.s32.totalorder %s3851_s28, 4   ;;  %s3855_s26 = smov %s3852_s24 }
 0x9da   :  { %25 = sbr.rel (!%p23_p3) target bundleno = 3 (0x3), region = 123 }
 0x9e1   :  { %2456 = vsyncpa [#allocation3], 1 }
 0x9e2   :  { %2458 = vsyncpa [#allocation3 + $0x1], 1 }

</bundles_post_ra>
